<compile_context>
chip_gen: v6e
topology: v6e:2x2x1
jax: 0.10.0
libtpu: 0.0.40
codegen_flags: <defaults>
</compile_context>

<pallas_src>
import jax
import jax.numpy as jnp
from jax.experimental import pallas as pl
from jax.experimental.pallas import tpu as pltpu


def _round_up(x, m):
    return (x + m - 1) // m * m


def _vmem_capacity_bytes():
    """Physical VMEM per core; conservative fallback if the query is unavailable."""
    try:
        info = pltpu.get_tpu_info()
        cap = getattr(info, "vmem_capacity_bytes", None)
        if cap:
            return int(cap)
    except Exception:
        pass
    return 64 << 20  # v7x per-core size == the smallest of the three generations


def _choose_block_b(B, L, H, itemsize, h_stream_budget_bytes):
    """Batch-tile size: as large as the double-buffered h stream allows, while
    keeping >=2 grid steps (megacore) when the batch is big enough to split."""
    if B <= 16:
        return B
    row_bytes = L * _round_up(H, 128) * itemsize          # one batch row of (L, TB, H)
    # (a) VMEM: two pipeline buffers of the h block must fit the budget.
    cap = max(((h_stream_budget_bytes // 2) // row_bytes) // 8 * 8, 8)
    # (b) megacore: aim for >=2 grid steps so "parallel" has something to shard.
    want = _round_up(pl.cdiv(B, 2), 8)
    block_b = min(cap, want)
    # (c) keep each step's DMA >= ~1 MiB so the ~0.35us/step pipeline overhead
    #     stays negligible.
    min_rows = min(_round_up(pl.cdiv(1 << 20, row_bytes), 8), cap)
    block_b = max(block_b, min_rows)
    return B if block_b >= B else block_b


def _attention_pool_kernel(h_ref, q_ref, w_ref, o_ref):
    # h_ref: (L, TB, H)  per-layer CLS slabs (batch block, layers leading)
    # q_ref: (H, 1)      attention query as a column
    # w_ref: (H, F)      output projection
    # o_ref: (TB, F)
    L = h_ref.shape[0]
    q_col = q_ref[...].astype(jnp.float32)                     # (H, 1)

    # Per-layer scores on the MXU (otherwise idle here): s_l[b] = <h[l, b, :], q>.
    scores = [
        jnp.dot(h_ref[l].astype(jnp.float32), q_col,
                preferred_element_type=jnp.float32)             # (TB, 1)
        for l in range(L)
    ]

    # Numerically stable softmax across the L score columns, done "vertically"
    # on (TB, 1) vectors -> no cross-lane (XLU) reductions.
    m = scores[0]
    for l in range(1, L):
        m = jnp.maximum(m, scores[l])
    exps = [jnp.exp(s - m) for s in scores]                     # EUP
    denom = exps[0]
    for l in range(1, L):
        denom = denom + exps[l]
    # One reciprocal per row + multiplies (instead of a broadcast divide).
    # Kept exact (approx=False) so the tight check against the f32 reference holds;
    # the cost is O(TB) either way.
    inv = pl.reciprocal(denom)                                  # (TB, 1)

    # pooled = sum_l softmax_l * h_l : unrolled VPU multiply-accumulate over the
    # static layer axis; slabs are sliced & cast per use (no full f32 tile copy).
    acc = (exps[0] * inv) * h_ref[0].astype(jnp.float32)        # (TB, H)
    for l in range(1, L):
        acc = acc + (exps[l] * inv) * h_ref[l].astype(jnp.float32)

    # Final projection on the MXU.
    out = jnp.dot(acc, w_ref[...].astype(jnp.float32),
                  preferred_element_type=jnp.float32)           # (TB, F)
    o_ref[...] = out.astype(o_ref.dtype)


def attention_pool(h_lbh, q, w_h, *, block_b=None):
    """Pallas attention pooling.

    h_lbh: (L, B, H) stacked per-layer states (layers leading), q: (1, H),
    w_h: (H, F)  ->  (B, F) float32.
    """
    L, B, H = h_lbh.shape
    Hw, F = w_h.shape
    assert Hw == H and q.shape == (1, H)

    q_col = q.reshape(H, 1)  # (1,H) -> (H,1); same row-major data, i.e. q.T

    itemsize = jnp.dtype(h_lbh.dtype).itemsize
    vmem_cap = _vmem_capacity_bytes()
    # 48 MiB on v7x (64 MiB physical), 96 MiB on v5e/v6e (128 MiB physical).
    vmem_limit = int(min((vmem_cap * 3) // 4, 100 << 20))
    # Budget for the double-buffered h stream; slack left for q/w/out/accumulators.
    h_budget = int(vmem_limit * 0.7)

    if block_b is None:
        block_b = _choose_block_b(B, L, H, itemsize, h_budget)
    grid = (pl.cdiv(B, block_b),)

    flops = B * (2 * L * H        # scores
                 + 2 * L * H      # pooled
                 + 2 * H * F)     # projection
    bytes_accessed = (itemsize * B * L * H            # h stream (dominant)
                      + 4 * (H + H * F + B * F))      # q, w_h, output

    return pl.pallas_call(
        _attention_pool_kernel,
        out_shape=jax.ShapeDtypeStruct((B, F), jnp.float32),
        grid=grid,
        in_specs=[
            pl.BlockSpec((L, block_b, H), lambda i: (0, i, 0)),
            pl.BlockSpec((H, 1), lambda i: (0, 0)),
            pl.BlockSpec((H, F), lambda i: (0, 0)),
        ],
        out_specs=pl.BlockSpec((block_b, F), lambda i: (i, 0)),
        compiler_params=pltpu.CompilerParams(
            dimension_semantics=("parallel",),
            vmem_limit_bytes=vmem_limit,
        ),
        cost_estimate=pl.CostEstimate(
            flops=flops,
            transcendentals=B * L,      # exp in the softmax
            bytes_accessed=bytes_accessed,
        ),
    )(h_lbh, q_col, w_h)


def attention_pooling_forward(all_hidden_states, q, w_h, num_layers, hidden_size):
    """Full module forward (eval mode): CLS extract + stack + view + attention."""
    # Faithful to torch: stack CLS states along dim=-1 -> (B, H, L), then a raw
    # row-major .view(-1, L, H).  This scrambles layer/hidden indices together;
    # it is reproduced deliberately for bug-compatibility with the PyTorch module.
    cls = jnp.stack(
        [all_hidden_states[l][:, 0] for l in range(1, num_layers + 1)], axis=-1
    )                                                   # (B, H, L)
    h = cls.reshape(-1, num_layers, hidden_size)        # (B, L, H)  torch-.view semantics
    # Kernel-friendly layout: layers leading so the kernel's tiled dims are
    # (batch, hidden) -- no sublane padding of the small L axis, and per-layer
    # slabs are free leading-axis views.  The scramble above already forces one
    # HBM materialization, so this transpose is the remaining plumbing cost of
    # staying bug-compatible with the original .view.
    h_lbh = jnp.transpose(h, (1, 0, 2))                 # (L, B, H)
    out = attention_pool(h_lbh, q, w_h)
    # TODO(synk): nn.Dropout(0.1) is identity in eval mode; not applied.
    return out


def _attention_pooling_ref(all_hidden_states, q, w_h, num_layers, hidden_size):
    """Pure-JAX reference mirroring the PyTorch code line-by-line (f32-exact matmuls)."""
    hp = jax.lax.Precision.HIGHEST
    hs = jnp.stack(
        [all_hidden_states[l][:, 0] for l in range(1, num_layers + 1)], axis=-1
    )
    h = hs.reshape(-1, num_layers, hidden_size)                          # (B, L, H)
    v = jnp.matmul(q, jnp.swapaxes(h, -2, -1), precision=hp)[:, 0, :]    # (B, L)
    v = jax.nn.softmax(v, axis=-1)
    v_temp = jnp.swapaxes(jnp.matmul(v[:, None, :], h, precision=hp), -2, -1)  # (B, H, 1)
    out = jnp.matmul(w_h.T, v_temp, precision=hp)[:, :, 0]               # (B, F)
    return out


if __name__ == "__main__":
    key = jax.random.PRNGKey(0)
    num_layers, hidden_size, hiddendim_fc = 4, 32, 16
    batch, seq = 2, 8

    keys = jax.random.split(key, num_layers + 3)
    # num_layers + 1 hidden-state tensors (layer 0 = embeddings, unused by the module).
    all_hidden_states = [
        jax.random.normal(keys[i], (batch, seq, hidden_size), dtype=jnp.float32)
        for i in range(num_layers + 1)
    ]
    # Parameters: q ~ N(0, 0.1) of shape (1, H); w_h ~ N(0, 0.1) of shape (H, F).
    q = 0.1 * jax.random.normal(keys[num_layers + 1], (1, hidden_size), dtype=jnp.float32)
    w_h = 0.1 * jax.random.normal(
        keys[num_layers + 2], (hidden_size, hiddendim_fc), dtype=jnp.float32
    )

    out = attention_pooling_forward(all_hidden_states, q, w_h, num_layers, hidden_size)
    out = jax.block_until_ready(out)

    ref = _attention_pooling_ref(all_hidden_states, q, w_h, num_layers, hidden_size)
    assert out.shape == (batch, hiddendim_fc), out.shape
    # Tolerance leaves headroom for MXU f32 accumulation-order differences vs the
    # XLA reference; real semantic bugs would be O(0.1-1) off.
    assert jnp.allclose(out, ref, atol=2e-3, rtol=2e-3), (out, ref)

    print("KERNEL_OK")
</pallas_src>

<mosaic_0001>
module attributes {stable_mosaic.version = 11 : i64} {
  func.func @_attention_pool_kernel(%arg0: i32, %arg1: memref<4x2x32xf32, #tpu.memory_space<vmem>>, %arg2: memref<32x1xf32, #tpu.memory_space<vmem>>, %arg3: memref<32x16xf32, #tpu.memory_space<vmem>>, %arg4: memref<2x16xf32, #tpu.memory_space<vmem>>) attributes {dimension_semantics = [#tpu.dimension_semantics<parallel>], iteration_bounds = array<i64: 1>, scalar_prefetch = 0 : i64, scratch_operands = 0 : i64, tpu.core_type = #tpu.core_type<tc>, window_params = [{transform_indices = @transform_0, window_bounds = array<i64: 4, 2, 32>}, {pipeline_mode = #tpu.pipeline_mode<synchronous>, transform_indices = @transform_1, window_bounds = array<i64: 32, 1>}, {pipeline_mode = #tpu.pipeline_mode<synchronous>, transform_indices = @transform_2, window_bounds = array<i64: 32, 16>}, {transform_indices = @transform_3, window_bounds = array<i64: 2, 16>}]} {
    %c0 = arith.constant 0 : index
    %c0_0 = arith.constant 0 : index
    %0 = vector.load %arg2[%c0, %c0_0] : memref<32x1xf32, #tpu.memory_space<vmem>>, vector<32x1xf32>
    %c0_1 = arith.constant 0 : index
    %c0_2 = arith.constant 0 : index
    %c0_3 = arith.constant 0 : index
    %1 = vector.load %arg1[%c0_1, %c0_2, %c0_3] : memref<4x2x32xf32, #tpu.memory_space<vmem>>, vector<1x2x32xf32>
    %2 = vector.shape_cast %1 : vector<1x2x32xf32> to vector<2x32xf32>
    %cst = arith.constant dense<0.000000e+00> : vector<2x1xf32>
    %3 = tpu.matmul %2, %0, %cst {dimension_numbers = #tpu.dot_dimension_numbers<[1], [0], [0], [1], [0, 0, 1, 1], [], []>} : vector<2x32xf32>, vector<32x1xf32>, vector<2x1xf32> -> vector<2x1xf32>
    %c1 = arith.constant 1 : index
    %c0_4 = arith.constant 0 : index
    %c0_5 = arith.constant 0 : index
    %4 = vector.load %arg1[%c1, %c0_4, %c0_5] : memref<4x2x32xf32, #tpu.memory_space<vmem>>, vector<1x2x32xf32>
    %5 = vector.shape_cast %4 : vector<1x2x32xf32> to vector<2x32xf32>
    %cst_6 = arith.constant dense<0.000000e+00> : vector<2x1xf32>
    %6 = tpu.matmul %5, %0, %cst_6 {dimension_numbers = #tpu.dot_dimension_numbers<[1], [0], [0], [1], [0, 0, 1, 1], [], []>} : vector<2x32xf32>, vector<32x1xf32>, vector<2x1xf32> -> vector<2x1xf32>
    %c2 = arith.constant 2 : index
    %c0_7 = arith.constant 0 : index
    %c0_8 = arith.constant 0 : index
    %7 = vector.load %arg1[%c2, %c0_7, %c0_8] : memref<4x2x32xf32, #tpu.memory_space<vmem>>, vector<1x2x32xf32>
    %8 = vector.shape_cast %7 : vector<1x2x32xf32> to vector<2x32xf32>
    %cst_9 = arith.constant dense<0.000000e+00> : vector<2x1xf32>
    %9 = tpu.matmul %8, %0, %cst_9 {dimension_numbers = #tpu.dot_dimension_numbers<[1], [0], [0], [1], [0, 0, 1, 1], [], []>} : vector<2x32xf32>, vector<32x1xf32>, vector<2x1xf32> -> vector<2x1xf32>
    %c3 = arith.constant 3 : index
    %c0_10 = arith.constant 0 : index
    %c0_11 = arith.constant 0 : index
    %10 = vector.load %arg1[%c3, %c0_10, %c0_11] : memref<4x2x32xf32, #tpu.memory_space<vmem>>, vector<1x2x32xf32>
    %11 = vector.shape_cast %10 : vector<1x2x32xf32> to vector<2x32xf32>
    %cst_12 = arith.constant dense<0.000000e+00> : vector<2x1xf32>
    %12 = tpu.matmul %11, %0, %cst_12 {dimension_numbers = #tpu.dot_dimension_numbers<[1], [0], [0], [1], [0, 0, 1, 1], [], []>} : vector<2x32xf32>, vector<32x1xf32>, vector<2x1xf32> -> vector<2x1xf32>
    %13 = arith.maximumf %3, %6 : vector<2x1xf32>
    %14 = arith.maximumf %13, %9 : vector<2x1xf32>
    %15 = arith.maximumf %14, %12 : vector<2x1xf32>
    %16 = arith.subf %3, %15 : vector<2x1xf32>
    %17 = math.exp %16 : vector<2x1xf32>
    %18 = arith.subf %6, %15 : vector<2x1xf32>
    %19 = math.exp %18 : vector<2x1xf32>
    %20 = arith.subf %9, %15 : vector<2x1xf32>
    %21 = math.exp %20 : vector<2x1xf32>
    %22 = arith.subf %12, %15 : vector<2x1xf32>
    %23 = math.exp %22 : vector<2x1xf32>
    %24 = arith.addf %17, %19 : vector<2x1xf32>
    %25 = arith.addf %24, %21 : vector<2x1xf32>
    %26 = arith.addf %25, %23 : vector<2x1xf32>
    %27 = tpu.reciprocal %26 : vector<2x1xf32> -> vector<2x1xf32>
    %28 = arith.mulf %17, %27 : vector<2x1xf32>
    %c0_13 = arith.constant 0 : index
    %c0_14 = arith.constant 0 : index
    %c0_15 = arith.constant 0 : index
    %29 = vector.load %arg1[%c0_13, %c0_14, %c0_15] : memref<4x2x32xf32, #tpu.memory_space<vmem>>, vector<1x2x32xf32>
    %30 = vector.shape_cast %29 : vector<1x2x32xf32> to vector<2x32xf32>
    %31 = vector.broadcast %28 : vector<2x1xf32> to vector<2x32xf32>
    %32 = arith.mulf %31, %30 : vector<2x32xf32>
    %33 = arith.mulf %19, %27 : vector<2x1xf32>
    %c1_16 = arith.constant 1 : index
    %c0_17 = arith.constant 0 : index
    %c0_18 = arith.constant 0 : index
    %34 = vector.load %arg1[%c1_16, %c0_17, %c0_18] : memref<4x2x32xf32, #tpu.memory_space<vmem>>, vector<1x2x32xf32>
    %35 = vector.shape_cast %34 : vector<1x2x32xf32> to vector<2x32xf32>
    %36 = vector.broadcast %33 : vector<2x1xf32> to vector<2x32xf32>
    %37 = arith.mulf %36, %35 : vector<2x32xf32>
    %38 = arith.addf %32, %37 : vector<2x32xf32>
    %39 = arith.mulf %21, %27 : vector<2x1xf32>
    %c2_19 = arith.constant 2 : index
    %c0_20 = arith.constant 0 : index
    %c0_21 = arith.constant 0 : index
    %40 = vector.load %arg1[%c2_19, %c0_20, %c0_21] : memref<4x2x32xf32, #tpu.memory_space<vmem>>, vector<1x2x32xf32>
    %41 = vector.shape_cast %40 : vector<1x2x32xf32> to vector<2x32xf32>
    %42 = vector.broadcast %39 : vector<2x1xf32> to vector<2x32xf32>
    %43 = arith.mulf %42, %41 : vector<2x32xf32>
    %44 = arith.addf %38, %43 : vector<2x32xf32>
    %45 = arith.mulf %23, %27 : vector<2x1xf32>
    %c3_22 = arith.constant 3 : index
    %c0_23 = arith.constant 0 : index
    %c0_24 = arith.constant 0 : index
    %46 = vector.load %arg1[%c3_22, %c0_23, %c0_24] : memref<4x2x32xf32, #tpu.memory_space<vmem>>, vector<1x2x32xf32>
    %47 = vector.shape_cast %46 : vector<1x2x32xf32> to vector<2x32xf32>
    %48 = vector.broadcast %45 : vector<2x1xf32> to vector<2x32xf32>
    %49 = arith.mulf %48, %47 : vector<2x32xf32>
    %50 = arith.addf %44, %49 : vector<2x32xf32>
    %c0_25 = arith.constant 0 : index
    %c0_26 = arith.constant 0 : index
    %51 = vector.load %arg3[%c0_25, %c0_26] : memref<32x16xf32, #tpu.memory_space<vmem>>, vector<32x16xf32>
    %cst_27 = arith.constant dense<0.000000e+00> : vector<2x16xf32>
    %52 = tpu.matmul %50, %51, %cst_27 {dimension_numbers = #tpu.dot_dimension_numbers<[1], [0], [0], [1], [0, 0, 1, 1], [], []>} : vector<2x32xf32>, vector<32x16xf32>, vector<2x16xf32> -> vector<2x16xf32>
    %c0_28 = arith.constant 0 : index
    %c0_29 = arith.constant 0 : index
    %53 = vector.load %arg4[%c0_28, %c0_29] : memref<2x16xf32, #tpu.memory_space<vmem>>, vector<2x16xf32>
    tpu.vector_store %arg4[%c0_28, %c0_29], %52 {strides = array<i32>} : memref<2x16xf32, #tpu.memory_space<vmem>>, vector<2x16xf32>,
    return
  }
  func.func @transform_0(%arg0: i32) -> (i32, i32, i32) {
    %c0_i32 = arith.constant 0 : i32
    %c0_i32_0 = arith.constant 0 : i32
    %c0_i32_1 = arith.constant 0 : i32
    return %c0_i32, %arg0, %c0_i32_0 : i32, i32, i32
  }
  func.func @transform_1(%arg0: i32) -> (i32, i32) {
    %c0_i32 = arith.constant 0 : i32
    %c0_i32_0 = arith.constant 0 : i32
    %c0_i32_1 = arith.constant 0 : i32
    return %c0_i32, %c0_i32_0 : i32, i32
  }
  func.func @transform_2(%arg0: i32) -> (i32, i32) {
    %c0_i32 = arith.constant 0 : i32
    %c0_i32_0 = arith.constant 0 : i32
    %c0_i32_1 = arith.constant 0 : i32
    return %c0_i32, %c0_i32_0 : i32, i32
  }
  func.func @transform_3(%arg0: i32) -> (i32, i32) {
    %c0_i32 = arith.constant 0 : i32
    %c0_i32_0 = arith.constant 0 : i32
    return %arg0, %c0_i32 : i32, i32
  }
}

</mosaic_0001>

<bundles_post_ra>
// kernel: tpu_custom_call.1
= control target key start
LH: loop header
LB: loop body
LE: loop exit
PB: predicated region body
PF: predicated region fallthrough
CT: control target
= control target key end

     0   :  { %v588_v1 = vmov 0.0   ;;  %s702_s0 = inlined_call_operand.vmem [shape: f32[4,2,32], index: 0, kind: input, shape index: {}]   ;;  %s703_s1 = inlined_call_operand.vmem [shape: f32[32,1], index: 1, kind: input, shape index: {}]   ;;  %s704_s2 = inlined_call_operand.vmem [shape: f32[32,16], index: 2, kind: input, shape index: {}]   ;;  %s705_s3 = inlined_call_operand.hbm [shape: f32[2,16], index: 3, kind: output, shape index: {}]  }
   0x1   :  { %v18_v0 = vld [vmem:[%s703_s1 + $0x18] sm:$0xff]  ;;  %495 = vmatprep.subr.mxu0 %v588_v1  ;;  %506 = vmatprep.subr.mxu1 %v588_v1  ;;  %v17_v2 = vld [vmem:[%s703_s1 + $0x10] sm:$0xff] }
   0x2   :  { %496 = vmatpush3.msra.mxu0 %v18_v0  ;;  %507 = vmatpush3.msra.mxu1 %v18_v0 }
   0x3   :  { %8 = vsyncpa [#allocation3], 0  ;;  %497 = vmatprep.subr.mxu0 %v588_v1  ;;  %508 = vmatprep.subr.mxu1 %v588_v1  ;;  %v16_v3 = vld [vmem:[%s703_s1 + $0x8] sm:$0xff]  ;;  %v15_v4 = vld [vmem:[%s703_s1] sm:$0xff]  ;;  %vm20_vm0 = vcmask 261120   ;;  %vm589_vm1 = vmmov 0  }
   0x4   :  { %498 = vmatpush3.msra.mxu0 %v17_v2  ;;  %509 = vmatpush3.msra.mxu1 %v17_v2  ;;  %v633_v5 = vld [vmem:[%s702_s0] sm:$0x3]  ;;  %v642_v6 = vld [vmem:[%s702_s0 + $0x2] sm:$0x3]  ;;  %v661_v7 = vld [vmem:[%s702_s0 + $0x4] sm:$0x3] }
   0x5   :  { %499 = vmatprep.subr.mxu0 %v588_v1  ;;  %510 = vmatprep.subr.mxu1 %v588_v1  ;;  %v666_v8 = vld [vmem:[%s702_s0 + $0x6] sm:$0x3]  ;;  %v590_v9 = vmov 0   ;;  %v372_v41 = vld [vmem:[%s704_s2 + $0x18] sm:$0xff]  ;;  %v371_v42 = vld [vmem:[%s704_s2 + $0x10] sm:$0xff]  ;;  %vm446_vm2 = vcmask 123904  }
   0x6   :  { %500 = vmatpush3.msra.mxu0 %v16_v3  ;;  %511 = vmatpush3.msra.mxu1 %v16_v3  ;;  %v370_v43 = vld [vmem:[%s704_s2 + $0x8] sm:$0xff]  ;;  %v369_v44 = vld [vmem:[%s704_s2] sm:$0xff]  ;;  %s591_s2 = smov [#allocation2]  }
   0x7   :  { %501 = vmatprep.subr.mxu0 %v588_v1  ;;  %512 = vmatprep.subr.mxu1 %v588_v1  ;;  %s454_s7 = sshll.u32 %s591_s2, 4  ;;  %s455_s7 = int_to_ptr.vmem [resolvable:$true] %s454_s7 }
   0x8   :  { %502 = vmatpush3.msra.mxu0 %v15_v4  ;;  %503 = vmatprep.mubr.msk.f32.mxu0 %vm589_vm1, %v588_v1  ;;  %s566_s8 = scalar_lea.vmem %s455_s7, 32  ;;  %p571_p1 = scmp.lt.s32.totalorder %s455_s7, %s455_s7 }
   0x9   :  { %513 = vmatpush3.msra.mxu1 %v15_v4  ;;  %504 = vmatmul.mubr.msk.f32.vlgmr.msra.gmra.mxu0 %vm20_vm0, %v633_v5  ;;  %p567_p0 = scmp.ne.s32.totalorder %s455_s7, %s566_s8  ;;  %p572_p2 = scmp.lt.s32.totalorder %s566_s8, %s566_s8 }
   0xa   :  { %514 = vmatprep.mubr.msk.f32.mxu1 %vm589_vm1, %v588_v1  ;;  %517 = vmatprep.subr.mxu0 %v588_v1 }
   0xb   :  { %528 = vmatprep.subr.mxu1 %v588_v1  ;;  %515 = vmatmul.mubr.msk.f32.vlgmr.msra.gmra.mxu1 %vm20_vm0, %v642_v6  ;;  %p573_p3 = por %p572_p2, %p571_p1 }
   0xc   :  { %518 = vmatpush3.msra.mxu0 %v18_v0  ;;  %529 = vmatpush3.msra.mxu1 %v18_v0 }
   0xd   :  { %519 = vmatprep.subr.mxu0 %v588_v1  ;;  %530 = vmatprep.subr.mxu1 %v588_v1  ;;  %p574_p4 = pnand %p573_p3, %p567_p0 }
   0xe   :  { %520 = vmatpush3.msra.mxu0 %v17_v2  ;;  %531 = vmatpush3.msra.mxu1 %v17_v2 }
   0xf   :  { %521 = vmatprep.subr.mxu0 %v588_v1  ;;  %532 = vmatprep.subr.mxu1 %v588_v1 }
  0x10   :  { %522 = vmatpush3.msra.mxu0 %v16_v3  ;;  %533 = vmatpush3.msra.mxu1 %v16_v3 }
  0x11   :  { %523 = vmatprep.subr.mxu0 %v588_v1  ;;  %534 = vmatprep.subr.mxu1 %v588_v1 }
  0x12   :  { %524 = vmatpush3.msra.mxu0 %v15_v4  ;;  %525 = vmatprep.mubr.msk.f32.mxu0 %vm589_vm1, %v588_v1 }
  0x13   :  { %535 = vmatpush3.msra.mxu1 %v15_v4  ;;  %536 = vmatprep.mubr.msk.f32.mxu1 %vm589_vm1, %v588_v1 }
  0x14   :  { %526 = vmatmul.mubr.msk.f32.vlgmr.msra.gmra.mxu0 %vm20_vm0, %v661_v7  ;;  %537 = vmatmul.mubr.msk.f32.vlgmr.msra.gmra.mxu1 %vm20_vm0, %v666_v8 }
  0x15   :  { %539 = vmatprep.subr.mxu0 %v588_v1  ;;  %547 = vmatprep.mubr.msk.f32.mxu0 %vm589_vm1, %v588_v1 }
  0x16   :  { %555 = vset.pattern.permute.xlu1 %v590_v9  ;;  %554 = vset.pattern.permute.xlu0 %v590_v9 }
  0x17   :  { %540 = vmatpush3.msra.mxu0 %v372_v41 }
  0x18   :  { %541 = vmatprep.subr.mxu0 %v588_v1 }
  0x19   :  { %542 = vmatpush3.msra.mxu0 %v371_v42 }
  0x1a   :  { %543 = vmatprep.subr.mxu0 %v588_v1 }
  0x1b   :  { %544 = vmatpush3.msra.mxu0 %v370_v43 }
  0x1c   :  { %545 = vmatprep.subr.mxu0 %v588_v1 }
  0x1d   :  { %546 = vmatpush3.msra.mxu0 %v369_v44 }
  0xc9   :  { %v90_v10 = vpop.f32.mrf.mxu0 }
  0xcb   :  { %v165_v11 = vpop.f32.mrf.mxu1  ;;  %v505_v12 = vpop.f32.mrf.mxu0 }
  0xcc   :  { %v319_v14 = vmax.f32 %v90_v10, %v165_v11 }
  0xcd   :  { %v516_v13 = vpop.f32.mrf.mxu1 }
  0xd4   :  { %v240_v15 = vpop.f32.mrf.mxu0  ;;  %v315_v16 = vpop.f32.mrf.mxu1 }
  0xd5   :  { %v320_v17 = vmax.f32 %v319_v14, %v240_v15 }
  0xd6   :  { %v527_v18 = vpop.f32.mrf.mxu0  ;;  %v538_v19 = vpop.f32.mrf.mxu1 }
  0xd7   :  { %v321_v20 = vmax.f32 %v320_v17, %v315_v16 }
  0xd9   :  { %v322_v21 = vsub.f32 %v90_v10, %v321_v20  ;;  %v325_v22 = vsub.f32 %v165_v11, %v321_v20  ;;  %v328_v23 = vsub.f32 %v240_v15, %v321_v20  ;;  %v331_v24 = vsub.f32 %v315_v16, %v321_v20 }
  0xdb   :  { %v323_v25 = vmul.f32 1.442695, %v322_v21  ;;  %v326_v26 = vmul.f32 1.442695, %v325_v22  ;;  %v329_v27 = vmul.f32 1.442695, %v328_v23 }
  0xdc   :  { %v332_v28 = vmul.f32 1.442695, %v331_v24 }
  0xdd   :  { %556 = vpow2.f32 %v323_v25 }
  0xde   :  { %558 = vpow2.f32 %v326_v26 }
  0xdf   :  { %560 = vpow2.f32 %v329_v27 }
  0xe0   :  { %562 = vpow2.f32 %v332_v28 }
  0xea   :  { %v557_v29 = vpop.eup %556 }
  0xeb   :  { %v559_v30 = vpop.eup %558 }
  0xec   :  { %v334_v31 = vadd.f32 %v559_v30, %v557_v29  ;;  %v561_v32 = vpop.eup %560 }
  0xed   :  { %v563_v34 = vpop.eup %562 }
  0xee   :  { %v335_v33 = vadd.f32 %v561_v32, %v334_v31 }
  0xf0   :  { %v336_v35 = vadd.f32 %v563_v34, %v335_v33 }
  0xf2   :  { %564 = vrcp.f32 %v336_v35 }
  0xff   :  { %v565_v36 = vpop.eup %564 }
 0x100   :  { %v353_v37 = vmul.f32 %v565_v36, %v561_v32  ;;  %v338_v38 = vmul.f32 %v565_v36, %v557_v29  ;;  %v361_v39 = vmul.f32 %v565_v36, %v563_v34  ;;  %v345_v40 = vmul.f32 %v565_v36, %v559_v30 }
 0x102   :  { %356 = vperm.xlu1 %555, %v353_v37   ;;  %341 = vperm.xlu0 %554, %v338_v38  }
 0x106   :  { %364 = vperm.xlu1 %555, %v361_v39   ;;  %348 = vperm.xlu0 %554, %v345_v40  }
 0x17d   :  { %v357_v45 = vpop.permute.xlu1 %356  ;;  %v342_v46 = vpop.permute.xlu0 %341 }
 0x17e   :  { %v344_v48 = vmul.f32 %v342_v46, %v633_v5  ;;  %v359_v51 = vmul.f32 %v661_v7, %v357_v45 }
 0x181   :  { %v349_v47 = vpop.permute.xlu0 %348  ;;  %v365_v50 = vpop.permute.xlu1 %364 }
 0x182   :  { %v351_v49 = vmul.f32 %v642_v6, %v349_v47  ;;  %v367_v53 = vmul.f32 %v666_v8, %v365_v50 }
 0x184   :  { %v352_v52 = vadd.f32 %v351_v49, %v344_v48 }
 0x186   :  { %v360_v54 = vadd.f32 %v359_v51, %v352_v52 }
 0x188   :  { %v368_v55 = vadd.f32 %v367_v53, %v360_v54 }
 0x18a   :  { %548 = vmatmul.mubr.msk.f32.vlgmr.msra.gmra.mxu0 %vm20_vm0, %v368_v55 }
 0x24a   :  { %v442_v56 = vpop.f32.mrf.mxu0 }
 0x24b   :  { %447 = vst.msk [vmem:[#allocation2] sm:$0x3] %vm446_vm2, %v442_v56 }
 0x24c   :  { %v549_v57 = vpop.f32.mrf.mxu0 }
 0x24d   :  { %577 = shalt.err (!%p574_p4)
}
 0x24e   :  { %457 = dma.vmem_to_hbm [thread:$0]  %s455_s7, 32, %s705_s3, [#allocation3]  }
 0x24f   :  { %586 = dma.done.wait [#allocation3], 32  }
 0x250   :  { %587 = vsyncadd [#allocation3], 4294967264 }
 0x251   :  { %461 = vsyncpa [#allocation3], 1 }

</bundles_post_ra>
